<compile_context>
chip_gen: v5e
topology: v5e:2x2
jax: 0.10.0
libtpu: 0.0.40
codegen_flags: <defaults>
</compile_context>

<pallas_src>
import functools

import jax
import jax.numpy as jnp
from jax.experimental import pallas as pl
from jax.experimental.pallas import tpu as pltpu


def _round_up(n, m):
    return ((n + m - 1) // m) * m


def _align_lanes(n):
    # 128-lane alignment; already-large dims align to 256 so v6e/v7x's 2x256x256
    # MXU passes are full (v5e's 4x128x128 is served fine by 128).
    return _round_up(n, 256) if n >= 256 else _round_up(n, 128)


def _pick_tm(B):
    if B <= 256:
        return _round_up(B, 8)
    # Prefer large tiles (per-step overhead ~0.35us; ~85% of roofline at 512)
    # while avoiding pathological zero-row padding.
    for cand in (512, 384, 256):
        if _round_up(B, cand) - B <= max(64, B // 8):
            return cand
    n_tiles = -(-B // 256)
    return _round_up(-(-B // n_tiles), 8)


def _pick_tc(Cp, cap=512):
    tc = min(cap, Cp)
    while Cp % tc != 0:
        tc -= 128
    return tc


def prepare_mlp_params(w1, b1, w2, b2, compute_dtype=jnp.float32):
    """One-time (outside the hot path) pad + transpose of PyTorch nn.Linear params.

    w1: (channel, input_dim), b1: (channel,), w2: (input_dim, channel), b2: (input_dim,)
    Returns MXU-native, lane-dense padded tensors:
      w1p: (Dp, Cp), b1p: (1, Cp), w2p: (Cp, Dp), b2p: (1, Dp)
    Padding is zero-filled so the dot products are unaffected.
    """
    C, D = w1.shape
    assert w2.shape == (D, C)
    Dp, Cp = _align_lanes(D), _align_lanes(C)
    cdt = jnp.dtype(compute_dtype)
    w1p = jnp.zeros((Dp, Cp), cdt).at[:D, :C].set(w1.T.astype(cdt))
    w2p = jnp.zeros((Cp, Dp), cdt).at[:C, :D].set(w2.T.astype(cdt))
    # Biases stay f32: added to the f32 MXU accumulator on the VPU.
    b1p = jnp.zeros((1, Cp), jnp.float32).at[0, :C].set(b1.astype(jnp.float32))
    b2p = jnp.zeros((1, Dp), jnp.float32).at[0, :D].set(b2.astype(jnp.float32))
    return w1p, b1p, w2p, b2p


def mlp_kernel(x_ref, w1_ref, b1_ref, w2_ref, b2_ref, o_ref, acc_ref):
    c = pl.program_id(1)

    @pl.when(c == 0)
    def _():
        acc_ref[...] = jnp.zeros_like(acc_ref)

    # fc1 slice: (tm, Dp) x (Dp, tc) -> (tm, tc), f32 accumulation + f32 bias.
    h = jnp.dot(x_ref[...], w1_ref[...], preferred_element_type=jnp.float32)
    h = h + b1_ref[...]
    # fc2 partial contraction over this C tile, accumulated across the C axis.
    acc_ref[...] += jnp.dot(h.astype(w2_ref.dtype), w2_ref[...],
                            preferred_element_type=jnp.float32)

    @pl.when(c == pl.num_programs(1) - 1)
    def _():
        o_ref[...] = (acc_ref[...] + b2_ref[...]).astype(o_ref.dtype)


@functools.partial(jax.jit, static_argnames=("tm", "tc"))
def mlp_forward(x, w1p, b1p, w2p, b2p, *, tm=None, tc=None):
    """x: (B, input_dim); padded params from prepare_mlp_params()."""
    B, D = x.shape
    Dp, Cp = w1p.shape
    assert Dp == _align_lanes(D), "params were prepared for a different input_dim"
    cdt = w1p.dtype
    isz = jnp.dtype(cdt).itemsize

    if tm is None:
        tm = _pick_tm(B)
        if _round_up(B, tm) // tm < 2 and B > 8:
            # Keep >= 2 batch tiles so the "parallel" axis can shard across
            # v7x's two TensorCores (a grid of 1 leaves a core idle).
            tm = max(8, _round_up((B + 1) // 2, 8))
    Bp = _round_up(B, tm)
    if tc is None:
        tc = _pick_tc(Cp)
    n_c = Cp // tc

    # Pad activations only when actually needed (hot-path HBM traffic).
    if (Bp, Dp) == (B, D) and x.dtype == cdt:
        xp = x
    else:
        xp = jnp.zeros((Bp, Dp), cdt).at[:B, :D].set(x.astype(cdt))

    # VMEM budget: x/out tiles (double buffered), accumulator scratch, streamed
    # weight tiles (double buffered), sublane-padded bias rows, and the live
    # (tm, tc) hidden intermediate (f32 + its compute-dtype copy).
    est = (2 * tm * Dp * isz
           + 2 * tm * Dp * 4
           + tm * Dp * 4
           + 2 * 2 * tc * Dp * isz
           + 2 * 8 * tc * 4 + 2 * 8 * Dp * 4
           + tm * tc * (4 + isz))
    try:
        vmem_cap = pltpu.get_tpu_info().vmem_capacity_bytes
    except Exception:
        vmem_cap = 64 << 20          # v7x per-TC VMEM: the safe lower bound
    vmem_limit = int(min(max(2 * est, 16 << 20), (vmem_cap * 3) // 4))

    grid = (Bp // tm, n_c)           # reduction (C) axis innermost

    out = pl.pallas_call(
        mlp_kernel,
        out_shape=jax.ShapeDtypeStruct((Bp, Dp), jnp.float32),
        grid_spec=pltpu.PrefetchScalarGridSpec(
            num_scalar_prefetch=0,
            grid=grid,
            in_specs=[
                pl.BlockSpec((tm, Dp), lambda i, c: (i, 0)),   # x: batch tile
                pl.BlockSpec((Dp, tc), lambda i, c: (0, c)),   # w1: C-tile stream
                pl.BlockSpec((1, tc), lambda i, c: (0, c)),    # b1: C-tile stream
                pl.BlockSpec((tc, Dp), lambda i, c: (c, 0)),   # w2: C-tile stream
                pl.BlockSpec((1, Dp), lambda i, c: (0, 0)),    # b2: resident
            ],
            out_specs=pl.BlockSpec((tm, Dp), lambda i, c: (i, 0)),
            scratch_shapes=[pltpu.VMEM((tm, Dp), jnp.float32)],
        ),
        compiler_params=pltpu.CompilerParams(
            dimension_semantics=("parallel", "arbitrary"),
            vmem_limit_bytes=vmem_limit,
        ),
    )(xp, w1p, b1p, w2p, b2p)

    return out[:B, :D]


def reference_forward(x, w1, b1, w2, b2):
    h = x @ w1.T + b1
    return h @ w2.T + b2


if __name__ == "__main__":
    input_dim = 10
    channel = 100    # nn.Linear defaults in MLP.__init__
    batch = 8

    key = jax.random.PRNGKey(0)
    kx, k1, k2, k3, k4 = jax.random.split(key, 5)

    # Deterministic, PyTorch-Linear-style uniform init (scale = 1/sqrt(fan_in)).
    x = jax.random.normal(kx, (batch, input_dim), dtype=jnp.float32)
    s1 = 1.0 / (input_dim ** 0.5)
    s2 = 1.0 / (channel ** 0.5)
    w1 = jax.random.uniform(k1, (channel, input_dim), jnp.float32, -s1, s1)
    b1 = jax.random.uniform(k2, (channel,), jnp.float32, -s1, s1)
    w2 = jax.random.uniform(k3, (input_dim, channel), jnp.float32, -s2, s2)
    b2 = jax.random.uniform(k4, (input_dim,), jnp.float32, -s2, s2)

    ref = reference_forward(x, w1, b1, w2, b2)

    # f32 path (exact PyTorch fp32 semantics).
    params_f32 = prepare_mlp_params(w1, b1, w2, b2, compute_dtype=jnp.float32)
    out = mlp_forward(x, *params_f32)
    jax.block_until_ready(out)
    assert out.shape == (batch, input_dim)
    assert jnp.allclose(out, ref, atol=1e-4, rtol=1e-4)

    # bf16 MXU-input path (f32 accumulation) — preferred on v6e/v7x when exact
    # fp32 is not required.  TODO(synk): optional fp8 weight path for v7x.
    params_bf16 = prepare_mlp_params(w1, b1, w2, b2, compute_dtype=jnp.bfloat16)
    out_bf16 = mlp_forward(x, *params_bf16)
    jax.block_until_ready(out_bf16)
    assert jnp.allclose(out_bf16, ref, atol=5e-2, rtol=5e-2)

    print("KERNEL_OK")
</pallas_src>

<mosaic_0001>
module attributes {stable_mosaic.version = 11 : i64} {
  func.func @mlp_kernel(%arg0: i32, %arg1: i32, %arg2: memref<8x128xf32, #tpu.memory_space<vmem>>, %arg3: memref<128x128xf32, #tpu.memory_space<vmem>>, %arg4: memref<1x128xf32, #tpu.memory_space<vmem>>, %arg5: memref<128x128xf32, #tpu.memory_space<vmem>>, %arg6: memref<1x128xf32, #tpu.memory_space<vmem>>, %arg7: memref<8x128xf32, #tpu.memory_space<vmem>>, %arg8: memref<8x128xf32, #tpu.memory_space<vmem>>) attributes {dimension_semantics = [#tpu.dimension_semantics<parallel>, #tpu.dimension_semantics<arbitrary>], iteration_bounds = array<i64: 1, 1>, scalar_prefetch = 0 : i64, scratch_operands = 1 : i64, tpu.core_type = #tpu.core_type<tc>, window_params = [{transform_indices = @transform_0, window_bounds = array<i64: 8, 128>}, {transform_indices = @transform_1, window_bounds = array<i64: 128, 128>}, {transform_indices = @transform_2, window_bounds = array<i64: 1, 128>}, {transform_indices = @transform_3, window_bounds = array<i64: 128, 128>}, {pipeline_mode = #tpu.pipeline_mode<synchronous>, transform_indices = @transform_4, window_bounds = array<i64: 1, 128>}, {transform_indices = @transform_5, window_bounds = array<i64: 8, 128>}]} {
    %c0_i32 = arith.constant 0 : i32
    %0 = arith.cmpi eq, %arg1, %c0_i32 : i32
    %1 = arith.extui %0 : i1 to i32
    %c0_i32_0 = arith.constant 0 : i32
    %2 = arith.cmpi ne, %1, %c0_i32_0 : i32
    scf.if %2 {
      %cst_15 = arith.constant 0.000000e+00 : f32
      %17 = vector.broadcast %cst_15 : f32 to vector<8x128xf32>
      %c0_16 = arith.constant 0 : index
      %c0_17 = arith.constant 0 : index
      %18 = vector.load %arg8[%c0_16, %c0_17] : memref<8x128xf32, #tpu.memory_space<vmem>>, vector<8x128xf32>
      tpu.vector_store %arg8[%c0_16, %c0_17], %17 {strides = array<i32>} : memref<8x128xf32, #tpu.memory_space<vmem>>, vector<8x128xf32>,
    } else {
    }
    %c0 = arith.constant 0 : index
    %c0_1 = arith.constant 0 : index
    %3 = vector.load %arg2[%c0, %c0_1] : memref<8x128xf32, #tpu.memory_space<vmem>>, vector<8x128xf32>
    %c0_2 = arith.constant 0 : index
    %c0_3 = arith.constant 0 : index
    %4 = vector.load %arg3[%c0_2, %c0_3] : memref<128x128xf32, #tpu.memory_space<vmem>>, vector<128x128xf32>
    %cst = arith.constant dense<0.000000e+00> : vector<8x128xf32>
    %5 = tpu.matmul %3, %4, %cst {dimension_numbers = #tpu.dot_dimension_numbers<[1], [0], [0], [1], [0, 0, 1, 1], [], []>} : vector<8x128xf32>, vector<128x128xf32>, vector<8x128xf32> -> vector<8x128xf32>
    %c0_4 = arith.constant 0 : index
    %c0_5 = arith.constant 0 : index
    %6 = vector.load %arg4[%c0_4, %c0_5] : memref<1x128xf32, #tpu.memory_space<vmem>>, vector<1x128xf32>
    %7 = vector.broadcast %6 : vector<1x128xf32> to vector<8x128xf32>
    %8 = arith.addf %5, %7 : vector<8x128xf32>
    %c0_6 = arith.constant 0 : index
    %c0_7 = arith.constant 0 : index
    %9 = vector.load %arg8[%c0_6, %c0_7] : memref<8x128xf32, #tpu.memory_space<vmem>>, vector<8x128xf32>
    %c0_8 = arith.constant 0 : index
    %c0_9 = arith.constant 0 : index
    %10 = vector.load %arg5[%c0_8, %c0_9] : memref<128x128xf32, #tpu.memory_space<vmem>>, vector<128x128xf32>
    %cst_10 = arith.constant dense<0.000000e+00> : vector<8x128xf32>
    %11 = tpu.matmul %8, %10, %cst_10 {dimension_numbers = #tpu.dot_dimension_numbers<[1], [0], [0], [1], [0, 0, 1, 1], [], []>} : vector<8x128xf32>, vector<128x128xf32>, vector<8x128xf32> -> vector<8x128xf32>
    %12 = arith.addf %9, %11 : vector<8x128xf32>
    %c0_11 = arith.constant 0 : index
    %c0_12 = arith.constant 0 : index
    %13 = vector.load %arg8[%c0_11, %c0_12] : memref<8x128xf32, #tpu.memory_space<vmem>>, vector<8x128xf32>
    tpu.vector_store %arg8[%c0_11, %c0_12], %12 {strides = array<i32>} : memref<8x128xf32, #tpu.memory_space<vmem>>, vector<8x128xf32>,
    %c0_i32_13 = arith.constant 0 : i32
    %14 = arith.cmpi eq, %arg1, %c0_i32_13 : i32
    %15 = arith.extui %14 : i1 to i32
    %c0_i32_14 = arith.constant 0 : i32
    %16 = arith.cmpi ne, %15, %c0_i32_14 : i32
    scf.if %16 {
      %c0_15 = arith.constant 0 : index
      %c0_16 = arith.constant 0 : index
      %17 = vector.load %arg8[%c0_15, %c0_16] : memref<8x128xf32, #tpu.memory_space<vmem>>, vector<8x128xf32>
      %c0_17 = arith.constant 0 : index
      %c0_18 = arith.constant 0 : index
      %18 = vector.load %arg6[%c0_17, %c0_18] : memref<1x128xf32, #tpu.memory_space<vmem>>, vector<1x128xf32>
      %19 = vector.broadcast %18 : vector<1x128xf32> to vector<8x128xf32>
      %20 = arith.addf %17, %19 : vector<8x128xf32>
      %c0_19 = arith.constant 0 : index
      %c0_20 = arith.constant 0 : index
      %21 = vector.load %arg7[%c0_19, %c0_20] : memref<8x128xf32, #tpu.memory_space<vmem>>, vector<8x128xf32>
      tpu.vector_store %arg7[%c0_19, %c0_20], %20 {strides = array<i32>} : memref<8x128xf32, #tpu.memory_space<vmem>>, vector<8x128xf32>,
    } else {
    }
    return
  }
  func.func @transform_0(%arg0: i32, %arg1: i32) -> (i32, i32) {
    %c0_i32 = arith.constant 0 : i32
    %c0_i32_0 = arith.constant 0 : i32
    return %arg0, %c0_i32 : i32, i32
  }
  func.func @transform_1(%arg0: i32, %arg1: i32) -> (i32, i32) {
    %c0_i32 = arith.constant 0 : i32
    %c0_i32_0 = arith.constant 0 : i32
    return %c0_i32, %arg1 : i32, i32
  }
  func.func @transform_2(%arg0: i32, %arg1: i32) -> (i32, i32) {
    %c0_i32 = arith.constant 0 : i32
    %c0_i32_0 = arith.constant 0 : i32
    return %c0_i32, %arg1 : i32, i32
  }
  func.func @transform_3(%arg0: i32, %arg1: i32) -> (i32, i32) {
    %c0_i32 = arith.constant 0 : i32
    %c0_i32_0 = arith.constant 0 : i32
    return %arg1, %c0_i32 : i32, i32
  }
  func.func @transform_4(%arg0: i32, %arg1: i32) -> (i32, i32) {
    %c0_i32 = arith.constant 0 : i32
    %c0_i32_0 = arith.constant 0 : i32
    %c0_i32_1 = arith.constant 0 : i32
    return %c0_i32, %c0_i32_0 : i32, i32
  }
  func.func @transform_5(%arg0: i32, %arg1: i32) -> (i32, i32) {
    %c0_i32 = arith.constant 0 : i32
    %c0_i32_0 = arith.constant 0 : i32
    return %arg0, %c0_i32 : i32, i32
  }
}

</mosaic_0001>

<bundles_post_ra>
// kernel: mlp_forward.1
= control target key start
LH: loop header
LB: loop body
LE: loop exit
PB: predicated region body
PF: predicated region fallthrough
CT: control target
= control target key end

     0   :  { %10 = vsyncpa [#allocation4], 0  ;;  %s304_s0 = inlined_call_operand.vmem [shape: f32[8,128], index: 0, kind: input, shape index: {}]   ;;  %s305_s1 = inlined_call_operand.hbm [shape: f32[128,128], index: 1, kind: input, shape index: {}]   ;;  %s306_s2 = inlined_call_operand.vmem [shape: f32[1,128], index: 2, kind: input, shape index: {}]   ;;  %s307_s3 = inlined_call_operand.hbm [shape: f32[128,128], index: 3, kind: input, shape index: {}]   ;;  %s308_s4 = inlined_call_operand.vmem [shape: f32[1,128], index: 4, kind: input, shape index: {}]   ;;  %s309_s5 = inlined_call_operand.hbm [shape: f32[8,128], index: 5, kind: output, shape index: {}]  }
   0x1   :  { %11 = vsyncpa [#allocation7], 0 }
   0x2   :  { %12 = vsyncpa [#allocation5], 0  ;;  %s19_s20 = sshll.u32 %s305_s1, 4  ;;  %s251_s21 = smov [#allocation3]   ;;  %s20_s20 = int_to_ptr.hbm [resolvable:$true] %s19_s20 }
   0x3   :  { %s21_s22 = sshll.u32 %s251_s21, 4  ;;  %s34_s25 = sshll.u32 %s307_s3, 4  ;;  %s22_s22 = int_to_ptr.vmem [resolvable:$true] %s21_s22  ;;  %s35_s25 = int_to_ptr.hbm [resolvable:$true] %s34_s25 }
   0x4   :  { %s252_s26 = smov 128   ;;  %s253_s27 = smov 8  }
   0x5   :  { %27 = dma.hbm_to_vmem [thread:$0]  %s20_s20, 2048, %s22_s22, [#allocation4], %s252_s26, %s252_s26, %s253_s27  }
   0x6   :  { %s254_s28 = smov [#allocation6]  }
   0x7   :  { %s36_s29 = sshll.u32 %s254_s28, 4  ;;  %s37_s29 = int_to_ptr.vmem [resolvable:$true] %s36_s29 }
   0x8   :  { %42 = dma.hbm_to_vmem [thread:$0]  %s35_s25, 2048, %s37_s29, [#allocation7], %s252_s26, %s252_s26, %s253_s27  }
   0x9   :  { %245 = dma.done.wait [#allocation4], 2048  }
   0xa   :  { %246 = vsyncadd [#allocation4], 4294965248 }
   0xb   :  { %247 = dma.done.wait [#allocation7], 2048  }
   0xc   :  { %248 = vsyncadd [#allocation7], 4294965248  ;;  %v74_v0 = vld [vmem:[#allocation3 + $0x78] sm:$0xff]  ;;  %v73_v1 = vld [vmem:[#allocation3 + $0x70] sm:$0xff]  ;;  %s155_s12 = sshll.u32 %s309_s5, 4  ;;  %s156_s12 = int_to_ptr.hbm [resolvable:$true] %s155_s12 }
   0xd   :  { %79 = vmatpush.msra.mxu0 %v74_v0  ;;  %v72_v2 = vld [vmem:[#allocation3 + $0x68] sm:$0xff]  ;;  %v71_v3 = vld [vmem:[#allocation3 + $0x60] sm:$0xff]  ;;  %v115_v4 = vld [vmem:[#allocation6 + $0x78] sm:$0xff] }
   0xe   :  { %v70_v5 = vld [vmem:[#allocation3 + $0x58] sm:$0xff]  ;;  %116 = vmatpush.msra.mxu1 %v115_v4  ;;  %v114_v6 = vld [vmem:[#allocation6 + $0x70] sm:$0xff]  ;;  %v113_v7 = vld [vmem:[#allocation6 + $0x68] sm:$0xff] }
   0xf   :  { %80 = vmatpush.msra.mxu0 %v73_v1  ;;  %v69_v8 = vld [vmem:[#allocation3 + $0x50] sm:$0xff]  ;;  %v112_v9 = vld [vmem:[#allocation6 + $0x60] sm:$0xff]  ;;  %v68_v10 = vld [vmem:[#allocation3 + $0x48] sm:$0xff] }
  0x10   :  { %117 = vmatpush.msra.mxu1 %v114_v6  ;;  %v111_v11 = vld [vmem:[#allocation6 + $0x58] sm:$0xff]  ;;  %v67_v12 = vld [vmem:[#allocation3 + $0x40] sm:$0xff]  ;;  %v110_v13 = vld [vmem:[#allocation6 + $0x50] sm:$0xff] }
  0x11   :  { %81 = vmatpush.msra.mxu0 %v72_v2  ;;  %v66_v14 = vld [vmem:[#allocation3 + $0x38] sm:$0xff]  ;;  %v109_v15 = vld [vmem:[#allocation6 + $0x48] sm:$0xff]  ;;  %v65_v16 = vld [vmem:[#allocation3 + $0x30] sm:$0xff] }
  0x12   :  { %118 = vmatpush.msra.mxu1 %v113_v7  ;;  %v108_v17 = vld [vmem:[#allocation6 + $0x40] sm:$0xff]  ;;  %v64_v18 = vld [vmem:[#allocation3 + $0x28] sm:$0xff]  ;;  %v107_v19 = vld [vmem:[#allocation6 + $0x38] sm:$0xff] }
  0x13   :  { %82 = vmatpush.msra.mxu0 %v71_v3  ;;  %v63_v20 = vld [vmem:[#allocation3 + $0x20] sm:$0xff]  ;;  %v106_v21 = vld [vmem:[#allocation6 + $0x30] sm:$0xff]  ;;  %v62_v22 = vld [vmem:[#allocation3 + $0x18] sm:$0xff] }
  0x14   :  { %119 = vmatpush.msra.mxu1 %v112_v9  ;;  %v105_v23 = vld [vmem:[#allocation6 + $0x28] sm:$0xff]  ;;  %v61_v24 = vld [vmem:[#allocation3 + $0x10] sm:$0xff]  ;;  %v104_v25 = vld [vmem:[#allocation6 + $0x20] sm:$0xff] }
  0x15   :  { %83 = vmatpush.msra.mxu0 %v70_v5  ;;  %v60_v26 = vld [vmem:[#allocation3 + $0x8] sm:$0xff]  ;;  %v103_v27 = vld [vmem:[#allocation6 + $0x18] sm:$0xff]  ;;  %v59_v28 = vld [vmem:[#allocation3] sm:$0xff] }
  0x16   :  { %120 = vmatpush.msra.mxu1 %v111_v11  ;;  %v58_v29 = vld [vmem:[%s304_s0] sm:$0xff]  ;;  %v102_v30 = vld [vmem:[#allocation6 + $0x10] sm:$0xff]  ;;  %v101_v31 = vld [vmem:[#allocation6 + $0x8] sm:$0xff]  ;;  %s255_s0 = smov [#allocation8]  }
  0x17   :  { %84 = vmatpush.msra.mxu0 %v69_v8  ;;  %v100_v32 = vld [vmem:[#allocation6] sm:$0xff]  ;;  %s153_s9 = sshll.u32 %s255_s0, 4  ;;  %s154_s9 = int_to_ptr.vmem [resolvable:$true] %s153_s9 }
  0x18   :  { %121 = vmatpush.msra.mxu1 %v110_v13  ;;  %v171_v33 = vld [vmem:[%s306_s2] ss:$0 sm:$0xff] }
  0x19   :  { %85 = vmatpush.msra.mxu0 %v68_v10  ;;  %v172_v36 = vld [vmem:[%s308_s4] ss:$0 sm:$0xff] }
  0x1a   :  { %122 = vmatpush.msra.mxu1 %v109_v15 }
  0x1b   :  { %86 = vmatpush.msra.mxu0 %v67_v12 }
  0x1c   :  { %123 = vmatpush.msra.mxu1 %v108_v17 }
  0x1d   :  { %87 = vmatpush.msra.mxu0 %v66_v14 }
  0x1e   :  { %124 = vmatpush.msra.mxu1 %v107_v19 }
  0x1f   :  { %88 = vmatpush.msra.mxu0 %v65_v16 }
  0x20   :  { %125 = vmatpush.msra.mxu1 %v106_v21 }
  0x21   :  { %89 = vmatpush.msra.mxu0 %v64_v18 }
  0x22   :  { %126 = vmatpush.msra.mxu1 %v105_v23 }
  0x23   :  { %90 = vmatpush.msra.mxu0 %v63_v20 }
  0x24   :  { %127 = vmatpush.msra.mxu1 %v104_v25 }
  0x25   :  { %91 = vmatpush.msra.mxu0 %v62_v22 }
  0x26   :  { %128 = vmatpush.msra.mxu1 %v103_v27 }
  0x27   :  { %92 = vmatpush.msra.mxu0 %v61_v24 }
  0x28   :  { %129 = vmatpush.msra.mxu1 %v102_v30 }
  0x29   :  { %93 = vmatpush.msra.mxu0 %v60_v26 }
  0x2a   :  { %130 = vmatpush.msra.mxu1 %v101_v31 }
  0x2b   :  { %94 = vmatpush.msra.mxu0 %v59_v28 }
  0x2c   :  { %95 = vmatmul.f32.vlgmr.msra.gmra.mxu0 %v58_v29  ;;  %131 = vmatpush.msra.mxu1 %v100_v32 }
  0xa9   :  { %v96_v34 = vpop.f32.mrf.mxu0 }
  0xaa   :  { %v97_v35 = vadd.f32 %v171_v33, %v96_v34 }
  0xac   :  { %132 = vmatmul.f32.vlgmr.msra.gmra.mxu1 %v97_v35 }
 0x129   :  { %v133_v37 = vpop.f32.mrf.mxu1 }
 0x12a   :  { %v146_v38 = vadd.f32 %v172_v36, %v133_v37 }
 0x12c   :  { %147 = vst [vmem:[#allocation8] sm:$0xff] %v146_v38 }
 0x12d   :  { %158 = dma.vmem_to_hbm [thread:$0]  %s154_s9, 128, %s156_s12, [#allocation5]  }
 0x12e   :  { %249 = dma.done.wait [#allocation5], 128  }
 0x12f   :  { %250 = vsyncadd [#allocation5], 4294967168 }
 0x130   :  { %163 = vsyncpa [#allocation4], 1 }
 0x131   :  { %164 = vsyncpa [#allocation7], 1 }
 0x132   :  { %165 = vsyncpa [#allocation5], 1 }

</bundles_post_ra>
